<compile_context>
chip_gen: v5e
topology: v5e:2x2
jax: 0.10.0
libtpu: 0.0.40
codegen_flags: <defaults>
</compile_context>

<pallas_src>
import jax
import jax.numpy as jnp
from jax.experimental import pallas as pl
from jax.experimental.pallas import tpu as pltpu


# ------------------------------- helpers -------------------------------

def _round_up(n, m):
    return ((n + m - 1) // m) * m


def _pad2(a, rows, cols):
    return jnp.pad(a, ((0, rows - a.shape[0]), (0, cols - a.shape[1])))


# ----------------------------- fused kernel -----------------------------

def _make_fused_kernel(n_layer, out_dim_true, out_dim_padded, matmul_dtype):
    """Kernel args: x_ref, w0, b0, ..., w_{L-1}, b_{L-1}, o_ref (all VMEM tiles)."""
    need_mask = out_dim_padded != out_dim_true

    def kernel(x_ref, *rest):
        o_ref = rest[-1]
        h = x_ref[...]                                   # (block_rows, in_pad) f32
        for layer in range(n_layer):
            w_ref = rest[2 * layer]                      # pre-cast (e.g. bf16) weights
            b_ref = rest[2 * layer + 1]                  # f32 bias
            lhs = h
            if matmul_dtype is not None and lhs.dtype != matmul_dtype:
                lhs = lhs.astype(matmul_dtype)           # only the dot operand is cast
            y = jnp.dot(lhs, w_ref[...], preferred_element_type=jnp.float32)
            y = y + b_ref[...]                           # bias broadcast (VPU, f32)
            if layer < n_layer - 1:
                h = jnp.maximum(y, 0.0)                  # ReLU (VPU, f32)
            elif n_layer == 1:
                # PyTorch forward returns the raw linear output when n_layer == 1.
                o_ref[...] = y.astype(o_ref.dtype)
            else:
                # log_softmax over features; mask padded lanes only if padding exists.
                if need_mask:
                    lane = jax.lax.broadcasted_iota(jnp.int32, y.shape, 1)
                    mask = lane < out_dim_true
                    y = jnp.where(mask, y, -jnp.inf)
                m = jnp.max(y, axis=-1, keepdims=True)
                z = y - m
                lse = jnp.log(jnp.sum(jnp.exp(z), axis=-1, keepdims=True))  # EUP
                r = z - lse
                if need_mask:
                    r = jnp.where(mask, r, 0.0)
                o_ref[...] = r.astype(o_ref.dtype)

    return kernel


# ------------------------------ forward path ------------------------------

def _forward_impl(x, padded_params, n_layer, in_dim, out_dim,
                  block_rows_req, matmul_dtype, unpad_output):
    B, in_dim_x = x.shape
    assert in_dim_x == in_dim, f"expected input dim {in_dim}, got {in_dim_x}"

    in_pad = padded_params[0][0].shape[0]
    out_pad = padded_params[-1][0].shape[1]

    # ---- batch tiling: lane/sublane-legal block, >=2 tiles when B >= 16 ----
    B8 = _round_up(B, 8)
    block_rows = min(block_rows_req, 512)
    if B8 >= 16:
        # Ensure at least 2 batch tiles so the "parallel" axis can shard across
        # the two v7x TensorCores (no effect on 1-TC v5e/v6e).
        block_rows = min(block_rows, _round_up(B8 // 2, 8))
    block_rows = max(8, min(block_rows, B8))
    B_pad = _round_up(B, block_rows)
    grid = (B_pad // block_rows,)

    x_pad = _pad2(x, B_pad, in_pad)

    flat_inputs = [x_pad]
    for wp, bp in padded_params:
        flat_inputs.append(wp)
        flat_inputs.append(bp)

    # ---- advisory cost estimate ----
    w_bytes = sum(int(wp.size) * wp.dtype.itemsize + int(bp.size) * bp.dtype.itemsize
                  for wp, bp in padded_params)
    flops = 2 * B_pad * sum(wp.shape[0] * wp.shape[1] for wp, _ in padded_params)
    transcendentals = 2 * B_pad * out_pad if n_layer > 1 else 0  # exp + log
    bytes_accessed = (int(x_pad.size) * x_pad.dtype.itemsize + w_bytes
                      + B_pad * out_pad * 4)

    kernel = _make_fused_kernel(n_layer, out_dim, out_pad, matmul_dtype)

    def build_specs(single_buffer_weights):
        specs = [pl.BlockSpec((block_rows, in_pad), lambda i: (i, 0))]
        for wp, bp in padded_params:
            if single_buffer_weights:
                # Constant index_map -> never re-fetched; single-buffer to halve
                # resident weight VMEM (matters most on v7x's 64 MiB).
                specs.append(pl.BlockSpec(wp.shape, lambda i: (0, 0),
                                          pipeline_mode=pl.Buffered(1)))
                specs.append(pl.BlockSpec(bp.shape, lambda i: (0, 0),
                                          pipeline_mode=pl.Buffered(1)))
            else:
                specs.append(pl.BlockSpec(wp.shape, lambda i: (0, 0)))
                specs.append(pl.BlockSpec(bp.shape, lambda i: (0, 0)))
        return specs

    def vmem_limit(single_buffer_weights):
        act = 2 * block_rows * in_pad * x_pad.dtype.itemsize   # double-buffered x tiles
        outb = 2 * block_rows * out_pad * 4                    # double-buffered out tiles
        wbuf = w_bytes * (1 if single_buffer_weights else 2)
        limit = int(1.3 * (act + outb + wbuf))
        return min(max(limit, 16 << 20), 64 << 20)

    def run(single_buffer_weights):
        return pl.pallas_call(
            kernel,
            out_shape=jax.ShapeDtypeStruct((B_pad, out_pad), jnp.float32),
            grid=grid,
            in_specs=build_specs(single_buffer_weights),
            out_specs=pl.BlockSpec((block_rows, out_pad), lambda i: (i, 0)),
            compiler_params=pltpu.CompilerParams(
                dimension_semantics=("parallel",),
                vmem_limit_bytes=vmem_limit(single_buffer_weights)),
            cost_estimate=pl.CostEstimate(
                flops=flops,
                transcendentals=transcendentals,
                bytes_accessed=bytes_accessed),
        )(*flat_inputs)

    try:
        y_pad = run(True)       # single-buffered constant weight/bias blocks
    except Exception:
        # Fallback if this jax build rejects pipeline_mode=pl.Buffered(1).
        y_pad = run(False)

    if not unpad_output:
        # Caller keeps the lane-padded (B_pad, out_pad) slab and slices/masks lazily
        # downstream (saves a full output read+write on bandwidth-limited chips).
        return y_pad
    return y_pad[:B, :out_dim]


def make_fc_output_model(params, n_layer, *, block_rows=256,
                         matmul_dtype=jnp.bfloat16, unpad_output=True):
    """Pad (to 128-lane multiples) and pre-cast params ONCE; return forward(x).

    params: list of (W[(in, out)] f32, b[(1, out)] f32), PyTorch Linear semantics
    with W stored (in, out). matmul_dtype=None keeps full-f32 MXU operands.
    """
    in_dim = params[0][0].shape[0]
    out_dim = params[-1][0].shape[1]

    padded_params = []
    for (w, b) in params:
        di, do = w.shape
        dip, dop = _round_up(di, 128), _round_up(do, 128)
        wp = _pad2(w, dip, dop)
        if matmul_dtype is not None:
            wp = wp.astype(matmul_dtype)           # pre-cast weights for the MXU
        bp = _pad2(b, 1, dop).astype(jnp.float32)  # bias stays f32 (VPU add)
        padded_params.append((jax.device_put(wp), jax.device_put(bp)))

    def forward(x):
        return _forward_impl(x, padded_params, n_layer, in_dim, out_dim,
                             block_rows, matmul_dtype, unpad_output)

    return forward


def fc_output_model_forward(x, params, n_layer, **kwargs):
    """One-off convenience wrapper (prefer make_fc_output_model for repeated calls)."""
    return make_fc_output_model(params, n_layer, **kwargs)(x)


# ------------------------- init + pure-JAX reference -------------------------

def init_params(key, n_layer, input_dim, hidden_dim, output_dim, dtype=jnp.float32):
    """PyTorch-style init: U(-1/sqrt(fan_in), 1/sqrt(fan_in)); W stored (in, out)."""
    if n_layer == 1:
        dims = [(input_dim, output_dim)]
    else:
        dims = [(input_dim, hidden_dim)]
        dims += [(hidden_dim, hidden_dim)] * (n_layer - 2)
        dims += [(hidden_dim, output_dim)]
    params = []
    for (fan_in, fan_out) in dims:
        key, kw, kb = jax.random.split(key, 3)
        bound = 1.0 / (fan_in ** 0.5)
        w = jax.random.uniform(kw, (fan_in, fan_out), dtype, -bound, bound)
        b = jax.random.uniform(kb, (1, fan_out), dtype, -bound, bound)
        params.append((w, b))
    return params


def reference_forward(x, params, n_layer, matmul_dtype=None):
    """Pure-JAX reference matching the PyTorch module; optional bf16 dot operands."""
    def dense(a, w, b):
        if matmul_dtype is not None:
            a = a.astype(matmul_dtype)
            w = w.astype(matmul_dtype)
        return jnp.dot(a, w, preferred_element_type=jnp.float32) + b

    if n_layer == 1:
        w, b = params[0]
        return dense(x, w, b)
    h = x
    for layer in range(n_layer - 1):
        w, b = params[layer]
        h = jnp.maximum(dense(h, w, b), 0.0)
    w, b = params[-1]
    return jax.nn.log_softmax(dense(h, w, b), axis=-1)


# ------------------------------------ main ------------------------------------

if __name__ == "__main__":
    # Small shapes consistent with the module's forward (2-D input: batch x features).
    n_layer = 3
    batch, input_dim, hidden_dim, output_dim = 8, 32, 32, 16

    key = jax.random.PRNGKey(0)
    key, kx = jax.random.split(key)
    x = jax.random.normal(kx, (batch, input_dim), jnp.float32)
    params = init_params(key, n_layer, input_dim, hidden_dim, output_dim)

    # Default bf16-MXU path: compare tightly against a matching bf16-matmul reference
    # and loosely against the pure-f32 reference (expected bf16 rounding only).
    model_bf16 = make_fc_output_model(params, n_layer)
    out = jax.block_until_ready(model_bf16(x))
    ref_bf16 = reference_forward(x, params, n_layer, matmul_dtype=jnp.bfloat16)
    ref_f32 = reference_forward(x, params, n_layer)
    assert out.shape == (batch, output_dim)
    assert jnp.allclose(out, ref_bf16, atol=1e-3, rtol=1e-3), "mismatch vs bf16 reference"
    assert jnp.allclose(out, ref_f32, atol=5e-2, rtol=5e-2), "mismatch vs f32 reference"

    # Full-f32 operand path: tight match against the f32 reference.
    model_f32 = make_fc_output_model(params, n_layer, matmul_dtype=None)
    out32 = jax.block_until_ready(model_f32(x))
    assert jnp.allclose(out32, ref_f32, atol=1e-5, rtol=1e-5), "mismatch vs reference (f32)"

    # n_layer == 1 path (raw linear output, no log_softmax).
    params1 = init_params(jax.random.PRNGKey(1), 1, input_dim, hidden_dim, output_dim)
    model1 = make_fc_output_model(params1, 1, matmul_dtype=None)
    out1 = jax.block_until_ready(model1(x))
    ref1 = reference_forward(x, params1, 1)
    assert jnp.allclose(out1, ref1, atol=1e-5, rtol=1e-5), "mismatch vs reference (n_layer=1)"

    # Ragged batch (exercises batch padding / no-dropped-rows path), reusing the model.
    xb = jax.random.normal(jax.random.PRNGKey(2), (5, input_dim), jnp.float32)
    outb = jax.block_until_ready(model_bf16(xb))
    refb = reference_forward(xb, params, n_layer, matmul_dtype=jnp.bfloat16)
    assert outb.shape == (5, output_dim)
    assert jnp.allclose(outb, refb, atol=1e-3, rtol=1e-3), "mismatch vs reference (ragged)"

    # Larger batch: exercises the multi-tile "parallel" grid (>= 2 tiles for 2 TCs).
    xl = jax.random.normal(jax.random.PRNGKey(3), (48, input_dim), jnp.float32)
    outl = jax.block_until_ready(model_bf16(xl))
    refl = reference_forward(xl, params, n_layer, matmul_dtype=jnp.bfloat16)
    assert outl.shape == (48, output_dim)
    assert jnp.allclose(outl, refl, atol=1e-3, rtol=1e-3), "mismatch vs reference (multi-tile)"

    print("KERNEL_OK")
</pallas_src>

<mosaic_0001>
module attributes {stable_mosaic.version = 11 : i64} {
  func.func @kernel(%arg0: i32, %arg1: memref<8x128xf32, #tpu.memory_space<vmem>>, %arg2: memref<128x128xbf16, #tpu.memory_space<vmem>>, %arg3: memref<1x128xf32, #tpu.memory_space<vmem>>, %arg4: memref<128x128xbf16, #tpu.memory_space<vmem>>, %arg5: memref<1x128xf32, #tpu.memory_space<vmem>>, %arg6: memref<128x128xbf16, #tpu.memory_space<vmem>>, %arg7: memref<1x128xf32, #tpu.memory_space<vmem>>, %arg8: memref<8x128xf32, #tpu.memory_space<vmem>>) attributes {dimension_semantics = [#tpu.dimension_semantics<parallel>], iteration_bounds = array<i64: 1>, scalar_prefetch = 0 : i64, scratch_operands = 0 : i64, tpu.core_type = #tpu.core_type<tc>, window_params = [{transform_indices = @transform_0, window_bounds = array<i64: 8, 128>}, {pipeline_mode = #tpu.pipeline_mode<synchronous>, transform_indices = @transform_1, window_bounds = array<i64: 128, 128>}, {pipeline_mode = #tpu.pipeline_mode<synchronous>, transform_indices = @transform_2, window_bounds = array<i64: 1, 128>}, {pipeline_mode = #tpu.pipeline_mode<synchronous>, transform_indices = @transform_3, window_bounds = array<i64: 128, 128>}, {pipeline_mode = #tpu.pipeline_mode<synchronous>, transform_indices = @transform_4, window_bounds = array<i64: 1, 128>}, {pipeline_mode = #tpu.pipeline_mode<synchronous>, transform_indices = @transform_5, window_bounds = array<i64: 128, 128>}, {pipeline_mode = #tpu.pipeline_mode<synchronous>, transform_indices = @transform_6, window_bounds = array<i64: 1, 128>}, {transform_indices = @transform_7, window_bounds = array<i64: 8, 128>}]} {
    %c0 = arith.constant 0 : index
    %c0_0 = arith.constant 0 : index
    %0 = vector.load %arg1[%c0, %c0_0] : memref<8x128xf32, #tpu.memory_space<vmem>>, vector<8x128xf32>
    %1 = arith.truncf %0 : vector<8x128xf32> to vector<8x128xbf16>
    %c0_1 = arith.constant 0 : index
    %c0_2 = arith.constant 0 : index
    %2 = vector.load %arg2[%c0_1, %c0_2] : memref<128x128xbf16, #tpu.memory_space<vmem>>, vector<128x128xbf16>
    %cst = arith.constant dense<0.000000e+00> : vector<8x128xf32>
    %3 = tpu.matmul %1, %2, %cst {dimension_numbers = #tpu.dot_dimension_numbers<[1], [0], [0], [1], [0, 0, 1, 1], [], []>} : vector<8x128xbf16>, vector<128x128xbf16>, vector<8x128xf32> -> vector<8x128xf32>
    %c0_3 = arith.constant 0 : index
    %c0_4 = arith.constant 0 : index
    %4 = vector.load %arg3[%c0_3, %c0_4] : memref<1x128xf32, #tpu.memory_space<vmem>>, vector<1x128xf32>
    %5 = vector.broadcast %4 : vector<1x128xf32> to vector<8x128xf32>
    %6 = arith.addf %3, %5 : vector<8x128xf32>
    %cst_5 = arith.constant 0.000000e+00 : f32
    %7 = vector.broadcast %cst_5 : f32 to vector<8x128xf32>
    %8 = arith.maximumf %6, %7 : vector<8x128xf32>
    %9 = arith.truncf %8 : vector<8x128xf32> to vector<8x128xbf16>
    %c0_6 = arith.constant 0 : index
    %c0_7 = arith.constant 0 : index
    %10 = vector.load %arg4[%c0_6, %c0_7] : memref<128x128xbf16, #tpu.memory_space<vmem>>, vector<128x128xbf16>
    %cst_8 = arith.constant dense<0.000000e+00> : vector<8x128xf32>
    %11 = tpu.matmul %9, %10, %cst_8 {dimension_numbers = #tpu.dot_dimension_numbers<[1], [0], [0], [1], [0, 0, 1, 1], [], []>} : vector<8x128xbf16>, vector<128x128xbf16>, vector<8x128xf32> -> vector<8x128xf32>
    %c0_9 = arith.constant 0 : index
    %c0_10 = arith.constant 0 : index
    %12 = vector.load %arg5[%c0_9, %c0_10] : memref<1x128xf32, #tpu.memory_space<vmem>>, vector<1x128xf32>
    %13 = vector.broadcast %12 : vector<1x128xf32> to vector<8x128xf32>
    %14 = arith.addf %11, %13 : vector<8x128xf32>
    %cst_11 = arith.constant 0.000000e+00 : f32
    %15 = vector.broadcast %cst_11 : f32 to vector<8x128xf32>
    %16 = arith.maximumf %14, %15 : vector<8x128xf32>
    %17 = arith.truncf %16 : vector<8x128xf32> to vector<8x128xbf16>
    %c0_12 = arith.constant 0 : index
    %c0_13 = arith.constant 0 : index
    %18 = vector.load %arg6[%c0_12, %c0_13] : memref<128x128xbf16, #tpu.memory_space<vmem>>, vector<128x128xbf16>
    %cst_14 = arith.constant dense<0.000000e+00> : vector<8x128xf32>
    %19 = tpu.matmul %17, %18, %cst_14 {dimension_numbers = #tpu.dot_dimension_numbers<[1], [0], [0], [1], [0, 0, 1, 1], [], []>} : vector<8x128xbf16>, vector<128x128xbf16>, vector<8x128xf32> -> vector<8x128xf32>
    %c0_15 = arith.constant 0 : index
    %c0_16 = arith.constant 0 : index
    %20 = vector.load %arg7[%c0_15, %c0_16] : memref<1x128xf32, #tpu.memory_space<vmem>>, vector<1x128xf32>
    %21 = vector.broadcast %20 : vector<1x128xf32> to vector<8x128xf32>
    %22 = arith.addf %19, %21 : vector<8x128xf32>
    %23 = tpu.iota {dimensions = array<i32: 1>} : vector<8x128xi32>
    %c16_i32 = arith.constant 16 : i32
    %24 = vector.broadcast %c16_i32 : i32 to vector<8x128xi32>
    %25 = arith.cmpi slt, %23, %24 : vector<8x128xi32>
    %cst_17 = arith.constant 0xFF800000 : f32
    %26 = vector.broadcast %cst_17 : f32 to vector<8x128xf32>
    %27 = arith.select %25, %22, %26 : vector<8x128xi1>, vector<8x128xf32>
    %cst_18 = arith.constant dense<0xFF800000> : vector<8xf32>
    %28 = vector.multi_reduction <maximumf>, %27, %cst_18 [1] : vector<8x128xf32> to vector<8xf32>
    %29 = vector.shape_cast %28 : vector<8xf32> to vector<8x1xf32>
    %30 = vector.broadcast %29 : vector<8x1xf32> to vector<8x128xf32>
    %31 = arith.subf %27, %30 : vector<8x128xf32>
    %32 = math.exp %31 : vector<8x128xf32>
    %cst_19 = arith.constant dense<0.000000e+00> : vector<8xf32>
    %33 = vector.multi_reduction <add>, %32, %cst_19 [1] : vector<8x128xf32> to vector<8xf32>
    %34 = vector.shape_cast %33 : vector<8xf32> to vector<8x1xf32>
    %35 = math.log %34 : vector<8x1xf32>
    %36 = vector.broadcast %35 : vector<8x1xf32> to vector<8x128xf32>
    %37 = arith.subf %31, %36 : vector<8x128xf32>
    %cst_20 = arith.constant 0.000000e+00 : f32
    %38 = vector.broadcast %cst_20 : f32 to vector<8x128xf32>
    %39 = arith.select %25, %37, %38 : vector<8x128xi1>, vector<8x128xf32>
    %c0_21 = arith.constant 0 : index
    %c0_22 = arith.constant 0 : index
    %40 = vector.load %arg8[%c0_21, %c0_22] : memref<8x128xf32, #tpu.memory_space<vmem>>, vector<8x128xf32>
    tpu.vector_store %arg8[%c0_21, %c0_22], %39 {strides = array<i32>} : memref<8x128xf32, #tpu.memory_space<vmem>>, vector<8x128xf32>,
    return
  }
  func.func @transform_0(%arg0: i32) -> (i32, i32) {
    %c0_i32 = arith.constant 0 : i32
    %c0_i32_0 = arith.constant 0 : i32
    return %arg0, %c0_i32 : i32, i32
  }
  func.func @transform_1(%arg0: i32) -> (i32, i32) {
    %c0_i32 = arith.constant 0 : i32
    %c0_i32_0 = arith.constant 0 : i32
    %c0_i32_1 = arith.constant 0 : i32
    return %c0_i32, %c0_i32_0 : i32, i32
  }
  func.func @transform_2(%arg0: i32) -> (i32, i32) {
    %c0_i32 = arith.constant 0 : i32
    %c0_i32_0 = arith.constant 0 : i32
    %c0_i32_1 = arith.constant 0 : i32
    return %c0_i32, %c0_i32_0 : i32, i32
  }
  func.func @transform_3(%arg0: i32) -> (i32, i32) {
    %c0_i32 = arith.constant 0 : i32
    %c0_i32_0 = arith.constant 0 : i32
    %c0_i32_1 = arith.constant 0 : i32
    return %c0_i32, %c0_i32_0 : i32, i32
  }
  func.func @transform_4(%arg0: i32) -> (i32, i32) {
    %c0_i32 = arith.constant 0 : i32
    %c0_i32_0 = arith.constant 0 : i32
    %c0_i32_1 = arith.constant 0 : i32
    return %c0_i32, %c0_i32_0 : i32, i32
  }
  func.func @transform_5(%arg0: i32) -> (i32, i32) {
    %c0_i32 = arith.constant 0 : i32
    %c0_i32_0 = arith.constant 0 : i32
    %c0_i32_1 = arith.constant 0 : i32
    return %c0_i32, %c0_i32_0 : i32, i32
  }
  func.func @transform_6(%arg0: i32) -> (i32, i32) {
    %c0_i32 = arith.constant 0 : i32
    %c0_i32_0 = arith.constant 0 : i32
    %c0_i32_1 = arith.constant 0 : i32
    return %c0_i32, %c0_i32_0 : i32, i32
  }
  func.func @transform_7(%arg0: i32) -> (i32, i32) {
    %c0_i32 = arith.constant 0 : i32
    %c0_i32_0 = arith.constant 0 : i32
    return %arg0, %c0_i32 : i32, i32
  }
}

module attributes {stable_mosaic.version = 11 : i64} {
  func.func @kernel(%arg0: i32, %arg1: memref<8x128xf32, #tpu.memory_space<vmem>>, %arg2: memref<128x128xbf16, #tpu.memory_space<vmem>>, %arg3: memref<1x128xf32, #tpu.memory_space<vmem>>, %arg4: memref<128x128xbf16, #tpu.memory_space<vmem>>, %arg5: memref<1x128xf32, #tpu.memory_space<vmem>>, %arg6: memref<128x128xbf16, #tpu.memory_space<vmem>>, %arg7: memref<1x128xf32, #tpu.memory_space<vmem>>, %arg8: memref<8x128xf32, #tpu.memory_space<vmem>>) attributes {dimension_semantics = [#tpu.dimension_semantics<parallel>], iteration_bounds = array<i64: 1>, scalar_prefetch = 0 : i64, scratch_operands = 0 : i64, tpu.core_type = #tpu.core_type<tc>, window_params = [{transform_indices = @transform_0, window_bounds = array<i64: 8, 128>}, {pipeline_mode = #tpu.pipeline_mode<synchronous>, transform_indices = @transform_1, window_bounds = array<i64: 128, 128>}, {pipeline_mode = #tpu.pipeline_mode<synchronous>, transform_indices = @transform_2, window_bounds = array<i64: 1, 128>}, {pipeline_mode = #tpu.pipeline_mode<synchronous>, transform_indices = @transform_3, window_bounds = array<i64: 128, 128>}, {pipeline_mode = #tpu.pipeline_mode<synchronous>, transform_indices = @transform_4, window_bounds = array<i64: 1, 128>}, {pipeline_mode = #tpu.pipeline_mode<synchronous>, transform_indices = @transform_5, window_bounds = array<i64: 128, 128>}, {pipeline_mode = #tpu.pipeline_mode<synchronous>, transform_indices = @transform_6, window_bounds = array<i64: 1, 128>}, {transform_indices = @transform_7, window_bounds = array<i64: 8, 128>}]} {
    %c0 = arith.constant 0 : index
    %c0_0 = arith.constant 0 : index
    %0 = vector.load %arg1[%c0, %c0_0] : memref<8x128xf32, #tpu.memory_space<vmem>>, vector<8x128xf32>
    %1 = arith.truncf %0 : vector<8x128xf32> to vector<8x128xbf16>
    %c0_1 = arith.constant 0 : index
    %c0_2 = arith.constant 0 : index
    %2 = vector.load %arg2[%c0_1, %c0_2] : memref<128x128xbf16, #tpu.memory_space<vmem>>, vector<128x128xbf16>
    %cst = arith.constant dense<0.000000e+00> : vector<8x128xf32>
    %3 = tpu.matmul %1, %2, %cst {dimension_numbers = #tpu.dot_dimension_numbers<[1], [0], [0], [1], [0, 0, 1, 1], [], []>} : vector<8x128xbf16>, vector<128x128xbf16>, vector<8x128xf32> -> vector<8x128xf32>
    %c0_3 = arith.constant 0 : index
    %c0_4 = arith.constant 0 : index
    %4 = vector.load %arg3[%c0_3, %c0_4] : memref<1x128xf32, #tpu.memory_space<vmem>>, vector<1x128xf32>
    %5 = vector.broadcast %4 : vector<1x128xf32> to vector<8x128xf32>
    %6 = arith.addf %3, %5 : vector<8x128xf32>
    %cst_5 = arith.constant 0.000000e+00 : f32
    %7 = vector.broadcast %cst_5 : f32 to vector<8x128xf32>
    %8 = arith.maximumf %6, %7 : vector<8x128xf32>
    %9 = arith.truncf %8 : vector<8x128xf32> to vector<8x128xbf16>
    %c0_6 = arith.constant 0 : index
    %c0_7 = arith.constant 0 : index
    %10 = vector.load %arg4[%c0_6, %c0_7] : memref<128x128xbf16, #tpu.memory_space<vmem>>, vector<128x128xbf16>
    %cst_8 = arith.constant dense<0.000000e+00> : vector<8x128xf32>
    %11 = tpu.matmul %9, %10, %cst_8 {dimension_numbers = #tpu.dot_dimension_numbers<[1], [0], [0], [1], [0, 0, 1, 1], [], []>} : vector<8x128xbf16>, vector<128x128xbf16>, vector<8x128xf32> -> vector<8x128xf32>
    %c0_9 = arith.constant 0 : index
    %c0_10 = arith.constant 0 : index
    %12 = vector.load %arg5[%c0_9, %c0_10] : memref<1x128xf32, #tpu.memory_space<vmem>>, vector<1x128xf32>
    %13 = vector.broadcast %12 : vector<1x128xf32> to vector<8x128xf32>
    %14 = arith.addf %11, %13 : vector<8x128xf32>
    %cst_11 = arith.constant 0.000000e+00 : f32
    %15 = vector.broadcast %cst_11 : f32 to vector<8x128xf32>
    %16 = arith.maximumf %14, %15 : vector<8x128xf32>
    %17 = arith.truncf %16 : vector<8x128xf32> to vector<8x128xbf16>
    %c0_12 = arith.constant 0 : index
    %c0_13 = arith.constant 0 : index
    %18 = vector.load %arg6[%c0_12, %c0_13] : memref<128x128xbf16, #tpu.memory_space<vmem>>, vector<128x128xbf16>
    %cst_14 = arith.constant dense<0.000000e+00> : vector<8x128xf32>
    %19 = tpu.matmul %17, %18, %cst_14 {dimension_numbers = #tpu.dot_dimension_numbers<[1], [0], [0], [1], [0, 0, 1, 1], [], []>} : vector<8x128xbf16>, vector<128x128xbf16>, vector<8x128xf32> -> vector<8x128xf32>
    %c0_15 = arith.constant 0 : index
    %c0_16 = arith.constant 0 : index
    %20 = vector.load %arg7[%c0_15, %c0_16] : memref<1x128xf32, #tpu.memory_space<vmem>>, vector<1x128xf32>
    %21 = vector.broadcast %20 : vector<1x128xf32> to vector<8x128xf32>
    %22 = arith.addf %19, %21 : vector<8x128xf32>
    %23 = tpu.iota {dimensions = array<i32: 1>} : vector<8x128xi32>
    %c16_i32 = arith.constant 16 : i32
    %24 = vector.broadcast %c16_i32 : i32 to vector<8x128xi32>
    %25 = arith.cmpi slt, %23, %24 : vector<8x128xi32>
    %cst_17 = arith.constant 0xFF800000 : f32
    %26 = vector.broadcast %cst_17 : f32 to vector<8x128xf32>
    %27 = arith.select %25, %22, %26 : vector<8x128xi1>, vector<8x128xf32>
    %cst_18 = arith.constant dense<0xFF800000> : vector<8xf32>
    %28 = vector.multi_reduction <maximumf>, %27, %cst_18 [1] : vector<8x128xf32> to vector<8xf32>
    %29 = vector.shape_cast %28 : vector<8xf32> to vector<8x1xf32>
    %30 = vector.broadcast %29 : vector<8x1xf32> to vector<8x128xf32>
    %31 = arith.subf %27, %30 : vector<8x128xf32>
    %32 = math.exp %31 : vector<8x128xf32>
    %cst_19 = arith.constant dense<0.000000e+00> : vector<8xf32>
    %33 = vector.multi_reduction <add>, %32, %cst_19 [1] : vector<8x128xf32> to vector<8xf32>
    %34 = vector.shape_cast %33 : vector<8xf32> to vector<8x1xf32>
    %35 = math.log %34 : vector<8x1xf32>
    %36 = vector.broadcast %35 : vector<8x1xf32> to vector<8x128xf32>
    %37 = arith.subf %31, %36 : vector<8x128xf32>
    %cst_20 = arith.constant 0.000000e+00 : f32
    %38 = vector.broadcast %cst_20 : f32 to vector<8x128xf32>
    %39 = arith.select %25, %37, %38 : vector<8x128xi1>, vector<8x128xf32>
    %c0_21 = arith.constant 0 : index
    %c0_22 = arith.constant 0 : index
    %40 = vector.load %arg8[%c0_21, %c0_22] : memref<8x128xf32, #tpu.memory_space<vmem>>, vector<8x128xf32>
    tpu.vector_store %arg8[%c0_21, %c0_22], %39 {strides = array<i32>} : memref<8x128xf32, #tpu.memory_space<vmem>>, vector<8x128xf32>,
    return
  }
  func.func @transform_0(%arg0: i32) -> (i32, i32) {
    %c0_i32 = arith.constant 0 : i32
    %c0_i32_0 = arith.constant 0 : i32
    return %arg0, %c0_i32 : i32, i32
  }
  func.func @transform_1(%arg0: i32) -> (i32, i32) {
    %c0_i32 = arith.constant 0 : i32
    %c0_i32_0 = arith.constant 0 : i32
    %c0_i32_1 = arith.constant 0 : i32
    return %c0_i32, %c0_i32_0 : i32, i32
  }
  func.func @transform_2(%arg0: i32) -> (i32, i32) {
    %c0_i32 = arith.constant 0 : i32
    %c0_i32_0 = arith.constant 0 : i32
    %c0_i32_1 = arith.constant 0 : i32
    return %c0_i32, %c0_i32_0 : i32, i32
  }
  func.func @transform_3(%arg0: i32) -> (i32, i32) {
    %c0_i32 = arith.constant 0 : i32
    %c0_i32_0 = arith.constant 0 : i32
    %c0_i32_1 = arith.constant 0 : i32
    return %c0_i32, %c0_i32_0 : i32, i32
  }
  func.func @transform_4(%arg0: i32) -> (i32, i32) {
    %c0_i32 = arith.constant 0 : i32
    %c0_i32_0 = arith.constant 0 : i32
    %c0_i32_1 = arith.constant 0 : i32
    return %c0_i32, %c0_i32_0 : i32, i32
  }
  func.func @transform_5(%arg0: i32) -> (i32, i32) {
    %c0_i32 = arith.constant 0 : i32
    %c0_i32_0 = arith.constant 0 : i32
    %c0_i32_1 = arith.constant 0 : i32
    return %c0_i32, %c0_i32_0 : i32, i32
  }
  func.func @transform_6(%arg0: i32) -> (i32, i32) {
    %c0_i32 = arith.constant 0 : i32
    %c0_i32_0 = arith.constant 0 : i32
    %c0_i32_1 = arith.constant 0 : i32
    return %c0_i32, %c0_i32_0 : i32, i32
  }
  func.func @transform_7(%arg0: i32) -> (i32, i32) {
    %c0_i32 = arith.constant 0 : i32
    %c0_i32_0 = arith.constant 0 : i32
    return %arg0, %c0_i32 : i32, i32
  }
}

</mosaic_0001>

<bundles_post_ra>
// kernel: tpu_custom_call.1
= control target key start
LH: loop header
LB: loop body
LE: loop exit
PB: predicated region body
PF: predicated region fallthrough
CT: control target
= control target key end

     0   :  { %12 = vsyncpa [#allocation3], 0  ;;  %s707_s0 = inlined_call_operand.hbm [shape: f32[8,128], index: 0, kind: input, shape index: {}]   ;;  %s708_s1 = inlined_call_operand.hbm [shape: bf16[128,128], index: 1, kind: input, shape index: {}]   ;;  %s709_s2 = inlined_call_operand.vmem [shape: f32[1,128], index: 2, kind: input, shape index: {}]   ;;  %s710_s3 = inlined_call_operand.hbm [shape: bf16[128,128], index: 3, kind: input, shape index: {}]   ;;  %s711_s4 = inlined_call_operand.vmem [shape: f32[1,128], index: 4, kind: input, shape index: {}]   ;;  %s712_s5 = inlined_call_operand.hbm [shape: bf16[128,128], index: 5, kind: input, shape index: {}]   ;;  %s713_s6 = inlined_call_operand.vmem [shape: f32[1,128], index: 6, kind: input, shape index: {}]   ;;  %s714_s7 = inlined_call_operand.hbm [shape: f32[8,128], index: 7, kind: output, shape index: {}]  }
   0x1   :  { %13 = vsyncpa [#allocation6], 0 }
   0x2   :  { %14 = vsyncpa [#allocation9], 0  ;;  %s31_s26 = sshll.u32 %s708_s1, 4  ;;  %s32_s26 = int_to_ptr.hbm [resolvable:$true] %s31_s26 }
   0x3   :  { %15 = vsyncpa [#allocation4], 0  ;;  %s634_s27 = smov [#allocation5]   ;;  %s21_s8 = sshll.u32 %s707_s0, 4  ;;  %s22_s8 = int_to_ptr.hbm [resolvable:$true] %s21_s8 }
   0x4   :  { %s33_s28 = sshll.u32 %s634_s27, 4  ;;  %s635_s9 = smov 64   ;;  %s34_s28 = int_to_ptr.vmem [resolvable:$true] %s33_s28 }
   0x5   :  { %s636_s10 = smov 4   ;;  %s637_s11 = smov [#allocation2]  }
   0x6   :  { %39 = dma.hbm_to_vmem [thread:$0]  %s32_s26, 1024, %s34_s28, [#allocation6], %s635_s9, %s635_s9, %s636_s10  }
   0x7   :  { %s23_s12 = sshll.u32 %s637_s11, 4  ;;  %s46_s15 = sshll.u32 %s710_s3, 4  ;;  %s24_s12 = int_to_ptr.vmem [resolvable:$true] %s23_s12  ;;  %s47_s15 = int_to_ptr.hbm [resolvable:$true] %s46_s15 }
   0x8   :  { %26 = dma.hbm_to_vmem [thread:$0]  %s22_s8, 128, %s24_s12, [#allocation3]  }
   0x9   :  { %s61_s17 = sshll.u32 %s712_s5, 4  ;;  %s638_s18 = smov [#allocation7]   ;;  %s62_s17 = int_to_ptr.hbm [resolvable:$true] %s61_s17 }
   0xa   :  { %s48_s19 = sshll.u32 %s638_s18, 4  ;;  %s639_s0 = smov [#allocation8]   ;;  %s49_s19 = int_to_ptr.vmem [resolvable:$true] %s48_s19 }
   0xb   :  { %54 = dma.hbm_to_vmem [thread:$0]  %s47_s15, 1024, %s49_s19, [#allocation6], %s635_s9, %s635_s9, %s636_s10  }
   0xc   :  { %s63_s20 = sshll.u32 %s639_s0, 4  ;;  %s64_s20 = int_to_ptr.vmem [resolvable:$true] %s63_s20 }
   0xd   :  { %69 = dma.hbm_to_vmem [thread:$0]  %s62_s17, 1024, %s64_s20, [#allocation9], %s635_s9, %s635_s9, %s636_s10  }
   0xe   :  { %626 = dma.done.wait [#allocation3], 128  }
   0xf   :  { %627 = vsyncadd [#allocation3], 4294967168 }
  0x10   :  { %628 = dma.done.wait [#allocation6], 2048  }
  0x11   :  { %629 = vsyncadd [#allocation6], 4294965248 }
  0x12   :  { %630 = dma.done.wait [#allocation9], 1024  }
  0x13   :  { %631 = vsyncadd [#allocation9], 4294966272  ;;  %v475_v0 = vld [vmem:[#allocation5 + $0x38] sm:$0xff]  ;;  %v474_v1 = vld [vmem:[#allocation5 + $0x30] sm:$0xff]  ;;  %v337_v38 = vlaneseq  ;;  %s360_s26 = sshll.u32 %s714_s7, 4  ;;  %s361_s26 = int_to_ptr.hbm [resolvable:$true] %s360_s26 }
  0x14   :  { %158 = vmatpush.bf16.msra.mxu0 %v475_v0  ;;  %v483_v2 = vld [vmem:[#allocation7 + $0x38] sm:$0xff]  ;;  %v482_v3 = vld [vmem:[#allocation7 + $0x30] sm:$0xff]  ;;  %v473_v4 = vld [vmem:[#allocation5 + $0x28] sm:$0xff] }
  0x15   :  { %241 = vmatpush.bf16.msra.mxu1 %v483_v2  ;;  %v481_v5 = vld [vmem:[#allocation7 + $0x28] sm:$0xff]  ;;  %v472_v6 = vld [vmem:[#allocation5 + $0x20] sm:$0xff]  ;;  %v471_v8 = vld [vmem:[#allocation5 + $0x18] sm:$0xff]  ;;  %v338_v39 = vand.u32 127, %v337_v38 }
  0x16   :  { %v480_v7 = vld [vmem:[#allocation7 + $0x20] sm:$0xff]  ;;  %v479_v9 = vld [vmem:[#allocation7 + $0x18] sm:$0xff]  ;;  %v470_v10 = vld [vmem:[#allocation5 + $0x10] sm:$0xff] }
  0x17   :  { %v478_v11 = vld [vmem:[#allocation7 + $0x10] sm:$0xff]  ;;  %v469_v12 = vld [vmem:[#allocation5 + $0x8] sm:$0xff]  ;;  %v468_v13 = vld [vmem:[#allocation5] sm:$0xff]  ;;  %vm339_vm0 = vcmp.lt.s32.totalorder %v338_v39, 16 }
  0x18   :  { %159 = vmatpush.bf16.msra.mxu0 %v474_v1  ;;  %v88_v14 = vld [vmem:[#allocation2] sm:$0xff]  ;;  %v477_v16 = vld [vmem:[#allocation7 + $0x8] sm:$0xff]  ;;  %v476_v17 = vld [vmem:[#allocation7] sm:$0xff] }
  0x19   :  { %242 = vmatpush.bf16.msra.mxu1 %v482_v3  ;;  %v89_v15 = vpack.c.bf16 %v88_v14, %v88_v14  ;;  %v491_v18 = vld [vmem:[#allocation8 + $0x38] sm:$0xff]  ;;  %v490_v19 = vld [vmem:[#allocation8 + $0x30] sm:$0xff]  ;;  %v489_v20 = vld [vmem:[#allocation8 + $0x28] sm:$0xff] }
  0x1a   :  { %324 = vmatpush.bf16.msra.mxu2 %v491_v18  ;;  %v488_v21 = vld [vmem:[#allocation8 + $0x20] sm:$0xff]  ;;  %v487_v22 = vld [vmem:[#allocation8 + $0x18] sm:$0xff]  ;;  %v486_v23 = vld [vmem:[#allocation8 + $0x10] sm:$0xff] }
  0x1b   :  { %v499_v24 = vld [vmem:[%s709_s2] ss:$0 sm:$0xff]  ;;  %v485_v30 = vld [vmem:[#allocation8 + $0x8] sm:$0xff]  ;;  %v484_v31 = vld [vmem:[#allocation8] sm:$0xff] }
  0x1c   :  { %160 = vmatpush.bf16.msra.mxu0 %v473_v4  ;;  %v500_v32 = vld [vmem:[%s711_s4] ss:$0 sm:$0xff]  ;;  %s640_s4 = smov [#allocation10]  }
  0x1d   :  { %243 = vmatpush.bf16.msra.mxu1 %v481_v5  ;;  %v501_v40 = vld [vmem:[%s713_s6] ss:$0 sm:$0xff]  ;;  %s358_s24 = sshll.u32 %s640_s4, 4  ;;  %s359_s24 = int_to_ptr.vmem [resolvable:$true] %s358_s24 }
  0x1e   :  { %325 = vmatpush.bf16.msra.mxu2 %v490_v19 }
  0x20   :  { %161 = vmatpush.bf16.msra.mxu0 %v472_v6 }
  0x21   :  { %244 = vmatpush.bf16.msra.mxu1 %v480_v7 }
  0x22   :  { %326 = vmatpush.bf16.msra.mxu2 %v489_v20 }
  0x24   :  { %162 = vmatpush.bf16.msra.mxu0 %v471_v8 }
  0x25   :  { %245 = vmatpush.bf16.msra.mxu1 %v479_v9 }
  0x26   :  { %327 = vmatpush.bf16.msra.mxu2 %v488_v21 }
  0x28   :  { %163 = vmatpush.bf16.msra.mxu0 %v470_v10 }
  0x29   :  { %246 = vmatpush.bf16.msra.mxu1 %v478_v11 }
  0x2a   :  { %328 = vmatpush.bf16.msra.mxu2 %v487_v22 }
  0x2c   :  { %164 = vmatpush.bf16.msra.mxu0 %v469_v12 }
  0x2d   :  { %247 = vmatpush.bf16.msra.mxu1 %v477_v16 }
  0x2e   :  { %329 = vmatpush.bf16.msra.mxu2 %v486_v23 }
  0x30   :  { %165 = vmatpush.bf16.msra.mxu0 %v468_v13 }
  0x31   :  { %248 = vmatpush.bf16.msra.mxu1 %v476_v17 }
  0x32   :  { %330 = vmatpush.bf16.msra.mxu2 %v485_v30 }
  0x33   :  { %166 = vmatmul.bf16.vlgmr.msra.gmra.mxu0 %v89_v15 }
  0x36   :  { %331 = vmatpush.bf16.msra.mxu2 %v484_v31 }
  0xb0   :  { %v167_v25 = vpop.f32.mrf.mxu0 }
  0xb1   :  { %v168_v26 = vadd.f32 %v499_v24, %v167_v25 }
  0xb3   :  { %v171_v27 = vmax.f32 %v168_v26, 0.0 }
  0xb5   :  { %v172_v28 = vpack.c.bf16 %v171_v27, %v171_v27 }
  0xb7   :  { %249 = vmatmul.bf16.vlgmr.msra.gmra.mxu1 %v172_v28 }
  0xb8   :  { %v169_v29 = vpop.f32.mrf.mxu0 }
 0x134   :  { %v250_v33 = vpop.f32.mrf.mxu1 }
 0x135   :  { %v251_v34 = vadd.f32 %v500_v32, %v250_v33 }
 0x137   :  { %v254_v35 = vmax.f32 %v251_v34, 0.0 }
 0x139   :  { %v255_v36 = vpack.c.bf16 %v254_v35, %v254_v35 }
 0x13b   :  { %332 = vmatmul.bf16.vlgmr.msra.gmra.mxu2 %v255_v36 }
 0x13c   :  { %v252_v37 = vpop.f32.mrf.mxu1 }
 0x1be   :  { %v333_v41 = vpop.f32.mrf.mxu2 }
 0x1bf   :  { %v334_v42 = vadd.f32 %v501_v40, %v333_v41 }
 0x1c1   :  { %v340_v43 = vsel %vm339_vm0, %v334_v42, -inf }
 0x1c2   :  { %341 = vmax.xlane.f32.xlu0 %v340_v43 }
 0x1c6   :  { %v335_v44 = vpop.f32.mrf.mxu2 }
 0x235   :  { %v342_v45 = vpop.xlane.xlu0 %341 }
 0x236   :  { %v343_v46 = vsub.f32 %v340_v43, %v342_v45 }
 0x238   :  { %v344_v47 = vmul.f32 1.442695, %v343_v46 }
 0x23a   :  { %502 = vpow2.f32 %v344_v47 }
 0x240   :  { %v503_v48 = vpop.eup %502 }
 0x241   :  { %346 = vadd.xlane.f32.xlu0 %v503_v48 }
 0x2b4   :  { %v347_v49 = vpop.xlane.xlu0 %346 }
 0x2b5   :  { %504 = vlog2.f32 %v347_v49 }
 0x2bb   :  { %v505_v50 = vpop.eup %504 }
 0x2bc   :  { %v349_v51 = vmul.f32 0.6931472, %v505_v50 }
 0x2be   :  { %v350_v52 = vsub.f32 %v343_v46, %v349_v51 }
 0x2c0   :  { %v351_v53 = vsel %vm339_vm0, %v350_v52, 0.0 }
 0x2c1   :  { %352 = vst [vmem:[#allocation10] sm:$0xff] %v351_v53 }
 0x2c2   :  { %363 = dma.vmem_to_hbm [thread:$0]  %s359_s24, 128, %s361_s26, [#allocation4]  }
 0x2c3   :  { %632 = dma.done.wait [#allocation4], 128  }
 0x2c4   :  { %633 = vsyncadd [#allocation4], 4294967168 }
 0x2c5   :  { %368 = vsyncpa [#allocation3], 1 }
 0x2c6   :  { %369 = vsyncpa [#allocation6], 1 }
 0x2c7   :  { %370 = vsyncpa [#allocation9], 1 }
 0x2c8   :  { %371 = vsyncpa [#allocation4], 1 }

// kernel: tpu_custom_call.1
= control target key start
LH: loop header
LB: loop body
LE: loop exit
PB: predicated region body
PF: predicated region fallthrough
CT: control target
= control target key end

     0   :  { %12 = vsyncpa [#allocation3], 0  ;;  %s707_s0 = inlined_call_operand.hbm [shape: f32[8,128], index: 0, kind: input, shape index: {}]   ;;  %s708_s1 = inlined_call_operand.hbm [shape: bf16[128,128], index: 1, kind: input, shape index: {}]   ;;  %s709_s2 = inlined_call_operand.vmem [shape: f32[1,128], index: 2, kind: input, shape index: {}]   ;;  %s710_s3 = inlined_call_operand.hbm [shape: bf16[128,128], index: 3, kind: input, shape index: {}]   ;;  %s711_s4 = inlined_call_operand.vmem [shape: f32[1,128], index: 4, kind: input, shape index: {}]   ;;  %s712_s5 = inlined_call_operand.hbm [shape: bf16[128,128], index: 5, kind: input, shape index: {}]   ;;  %s713_s6 = inlined_call_operand.vmem [shape: f32[1,128], index: 6, kind: input, shape index: {}]   ;;  %s714_s7 = inlined_call_operand.hbm [shape: f32[8,128], index: 7, kind: output, shape index: {}]  }
   0x1   :  { %13 = vsyncpa [#allocation6], 0 }
   0x2   :  { %14 = vsyncpa [#allocation9], 0  ;;  %s31_s26 = sshll.u32 %s708_s1, 4  ;;  %s32_s26 = int_to_ptr.hbm [resolvable:$true] %s31_s26 }
   0x3   :  { %15 = vsyncpa [#allocation4], 0  ;;  %s634_s27 = smov [#allocation5]   ;;  %s21_s8 = sshll.u32 %s707_s0, 4  ;;  %s22_s8 = int_to_ptr.hbm [resolvable:$true] %s21_s8 }
   0x4   :  { %s33_s28 = sshll.u32 %s634_s27, 4  ;;  %s635_s9 = smov 64   ;;  %s34_s28 = int_to_ptr.vmem [resolvable:$true] %s33_s28 }
   0x5   :  { %s636_s10 = smov 4   ;;  %s637_s11 = smov [#allocation2]  }
   0x6   :  { %39 = dma.hbm_to_vmem [thread:$0]  %s32_s26, 1024, %s34_s28, [#allocation6], %s635_s9, %s635_s9, %s636_s10  }
   0x7   :  { %s23_s12 = sshll.u32 %s637_s11, 4  ;;  %s46_s15 = sshll.u32 %s710_s3, 4  ;;  %s24_s12 = int_to_ptr.vmem [resolvable:$true] %s23_s12  ;;  %s47_s15 = int_to_ptr.hbm [resolvable:$true] %s46_s15 }
   0x8   :  { %26 = dma.hbm_to_vmem [thread:$0]  %s22_s8, 128, %s24_s12, [#allocation3]  }
   0x9   :  { %s61_s17 = sshll.u32 %s712_s5, 4  ;;  %s638_s18 = smov [#allocation7]   ;;  %s62_s17 = int_to_ptr.hbm [resolvable:$true] %s61_s17 }
   0xa   :  { %s48_s19 = sshll.u32 %s638_s18, 4  ;;  %s639_s0 = smov [#allocation8]   ;;  %s49_s19 = int_to_ptr.vmem [resolvable:$true] %s48_s19 }
   0xb   :  { %54 = dma.hbm_to_vmem [thread:$0]  %s47_s15, 1024, %s49_s19, [#allocation6], %s635_s9, %s635_s9, %s636_s10  }
   0xc   :  { %s63_s20 = sshll.u32 %s639_s0, 4  ;;  %s64_s20 = int_to_ptr.vmem [resolvable:$true] %s63_s20 }
   0xd   :  { %69 = dma.hbm_to_vmem [thread:$0]  %s62_s17, 1024, %s64_s20, [#allocation9], %s635_s9, %s635_s9, %s636_s10  }
   0xe   :  { %626 = dma.done.wait [#allocation3], 128  }
   0xf   :  { %627 = vsyncadd [#allocation3], 4294967168 }
  0x10   :  { %628 = dma.done.wait [#allocation6], 2048  }
  0x11   :  { %629 = vsyncadd [#allocation6], 4294965248 }
  0x12   :  { %630 = dma.done.wait [#allocation9], 1024  }
  0x13   :  { %631 = vsyncadd [#allocation9], 4294966272  ;;  %v475_v0 = vld [vmem:[#allocation5 + $0x38] sm:$0xff]  ;;  %v474_v1 = vld [vmem:[#allocation5 + $0x30] sm:$0xff]  ;;  %v337_v38 = vlaneseq  ;;  %s360_s26 = sshll.u32 %s714_s7, 4  ;;  %s361_s26 = int_to_ptr.hbm [resolvable:$true] %s360_s26 }
  0x14   :  { %158 = vmatpush.bf16.msra.mxu0 %v475_v0  ;;  %v483_v2 = vld [vmem:[#allocation7 + $0x38] sm:$0xff]  ;;  %v482_v3 = vld [vmem:[#allocation7 + $0x30] sm:$0xff]  ;;  %v473_v4 = vld [vmem:[#allocation5 + $0x28] sm:$0xff] }
  0x15   :  { %241 = vmatpush.bf16.msra.mxu1 %v483_v2  ;;  %v481_v5 = vld [vmem:[#allocation7 + $0x28] sm:$0xff]  ;;  %v472_v6 = vld [vmem:[#allocation5 + $0x20] sm:$0xff]  ;;  %v471_v8 = vld [vmem:[#allocation5 + $0x18] sm:$0xff]  ;;  %v338_v39 = vand.u32 127, %v337_v38 }
  0x16   :  { %v480_v7 = vld [vmem:[#allocation7 + $0x20] sm:$0xff]  ;;  %v479_v9 = vld [vmem:[#allocation7 + $0x18] sm:$0xff]  ;;  %v470_v10 = vld [vmem:[#allocation5 + $0x10] sm:$0xff] }
  0x17   :  { %v478_v11 = vld [vmem:[#allocation7 + $0x10] sm:$0xff]  ;;  %v469_v12 = vld [vmem:[#allocation5 + $0x8] sm:$0xff]  ;;  %v468_v13 = vld [vmem:[#allocation5] sm:$0xff]  ;;  %vm339_vm0 = vcmp.lt.s32.totalorder %v338_v39, 16 }
  0x18   :  { %159 = vmatpush.bf16.msra.mxu0 %v474_v1  ;;  %v88_v14 = vld [vmem:[#allocation2] sm:$0xff]  ;;  %v477_v16 = vld [vmem:[#allocation7 + $0x8] sm:$0xff]  ;;  %v476_v17 = vld [vmem:[#allocation7] sm:$0xff] }
  0x19   :  { %242 = vmatpush.bf16.msra.mxu1 %v482_v3  ;;  %v89_v15 = vpack.c.bf16 %v88_v14, %v88_v14  ;;  %v491_v18 = vld [vmem:[#allocation8 + $0x38] sm:$0xff]  ;;  %v490_v19 = vld [vmem:[#allocation8 + $0x30] sm:$0xff]  ;;  %v489_v20 = vld [vmem:[#allocation8 + $0x28] sm:$0xff] }
  0x1a   :  { %324 = vmatpush.bf16.msra.mxu2 %v491_v18  ;;  %v488_v21 = vld [vmem:[#allocation8 + $0x20] sm:$0xff]  ;;  %v487_v22 = vld [vmem:[#allocation8 + $0x18] sm:$0xff]  ;;  %v486_v23 = vld [vmem:[#allocation8 + $0x10] sm:$0xff] }
  0x1b   :  { %v499_v24 = vld [vmem:[%s709_s2] ss:$0 sm:$0xff]  ;;  %v485_v30 = vld [vmem:[#allocation8 + $0x8] sm:$0xff]  ;;  %v484_v31 = vld [vmem:[#allocation8] sm:$0xff] }
  0x1c   :  { %160 = vmatpush.bf16.msra.mxu0 %v473_v4  ;;  %v500_v32 = vld [vmem:[%s711_s4] ss:$0 sm:$0xff]  ;;  %s640_s4 = smov [#allocation10]  }
  0x1d   :  { %243 = vmatpush.bf16.msra.mxu1 %v481_v5  ;;  %v501_v40 = vld [vmem:[%s713_s6] ss:$0 sm:$0xff]  ;;  %s358_s24 = sshll.u32 %s640_s4, 4  ;;  %s359_s24 = int_to_ptr.vmem [resolvable:$true] %s358_s24 }
  0x1e   :  { %325 = vmatpush.bf16.msra.mxu2 %v490_v19 }
  0x20   :  { %161 = vmatpush.bf16.msra.mxu0 %v472_v6 }
  0x21   :  { %244 = vmatpush.bf16.msra.mxu1 %v480_v7 }
  0x22   :  { %326 = vmatpush.bf16.msra.mxu2 %v489_v20 }
  0x24   :  { %162 = vmatpush.bf16.msra.mxu0 %v471_v8 }
  0x25   :  { %245 = vmatpush.bf16.msra.mxu1 %v479_v9 }
  0x26   :  { %327 = vmatpush.bf16.msra.mxu2 %v488_v21 }
  0x28   :  { %163 = vmatpush.bf16.msra.mxu0 %v470_v10 }
  0x29   :  { %246 = vmatpush.bf16.msra.mxu1 %v478_v11 }
  0x2a   :  { %328 = vmatpush.bf16.msra.mxu2 %v487_v22 }
  0x2c   :  { %164 = vmatpush.bf16.msra.mxu0 %v469_v12 }
  0x2d   :  { %247 = vmatpush.bf16.msra.mxu1 %v477_v16 }
  0x2e   :  { %329 = vmatpush.bf16.msra.mxu2 %v486_v23 }
  0x30   :  { %165 = vmatpush.bf16.msra.mxu0 %v468_v13 }
  0x31   :  { %248 = vmatpush.bf16.msra.mxu1 %v476_v17 }
  0x32   :  { %330 = vmatpush.bf16.msra.mxu2 %v485_v30 }
  0x33   :  { %166 = vmatmul.bf16.vlgmr.msra.gmra.mxu0 %v89_v15 }
  0x36   :  { %331 = vmatpush.bf16.msra.mxu2 %v484_v31 }
  0xb0   :  { %v167_v25 = vpop.f32.mrf.mxu0 }
  0xb1   :  { %v168_v26 = vadd.f32 %v499_v24, %v167_v25 }
  0xb3   :  { %v171_v27 = vmax.f32 %v168_v26, 0.0 }
  0xb5   :  { %v172_v28 = vpack.c.bf16 %v171_v27, %v171_v27 }
  0xb7   :  { %249 = vmatmul.bf16.vlgmr.msra.gmra.mxu1 %v172_v28 }
  0xb8   :  { %v169_v29 = vpop.f32.mrf.mxu0 }
 0x134   :  { %v250_v33 = vpop.f32.mrf.mxu1 }
 0x135   :  { %v251_v34 = vadd.f32 %v500_v32, %v250_v33 }
 0x137   :  { %v254_v35 = vmax.f32 %v251_v34, 0.0 }
 0x139   :  { %v255_v36 = vpack.c.bf16 %v254_v35, %v254_v35 }
 0x13b   :  { %332 = vmatmul.bf16.vlgmr.msra.gmra.mxu2 %v255_v36 }
 0x13c   :  { %v252_v37 = vpop.f32.mrf.mxu1 }
 0x1be   :  { %v333_v41 = vpop.f32.mrf.mxu2 }
 0x1bf   :  { %v334_v42 = vadd.f32 %v501_v40, %v333_v41 }
 0x1c1   :  { %v340_v43 = vsel %vm339_vm0, %v334_v42, -inf }
 0x1c2   :  { %341 = vmax.xlane.f32.xlu0 %v340_v43 }
 0x1c6   :  { %v335_v44 = vpop.f32.mrf.mxu2 }
 0x235   :  { %v342_v45 = vpop.xlane.xlu0 %341 }
 0x236   :  { %v343_v46 = vsub.f32 %v340_v43, %v342_v45 }
 0x238   :  { %v344_v47 = vmul.f32 1.442695, %v343_v46 }
 0x23a   :  { %502 = vpow2.f32 %v344_v47 }
 0x240   :  { %v503_v48 = vpop.eup %502 }
 0x241   :  { %346 = vadd.xlane.f32.xlu0 %v503_v48 }
 0x2b4   :  { %v347_v49 = vpop.xlane.xlu0 %346 }
 0x2b5   :  { %504 = vlog2.f32 %v347_v49 }
 0x2bb   :  { %v505_v50 = vpop.eup %504 }
 0x2bc   :  { %v349_v51 = vmul.f32 0.6931472, %v505_v50 }
 0x2be   :  { %v350_v52 = vsub.f32 %v343_v46, %v349_v51 }
 0x2c0   :  { %v351_v53 = vsel %vm339_vm0, %v350_v52, 0.0 }
 0x2c1   :  { %352 = vst [vmem:[#allocation10] sm:$0xff] %v351_v53 }
 0x2c2   :  { %363 = dma.vmem_to_hbm [thread:$0]  %s359_s24, 128, %s361_s26, [#allocation4]  }
 0x2c3   :  { %632 = dma.done.wait [#allocation4], 128  }
 0x2c4   :  { %633 = vsyncadd [#allocation4], 4294967168 }
 0x2c5   :  { %368 = vsyncpa [#allocation3], 1 }
 0x2c6   :  { %369 = vsyncpa [#allocation6], 1 }
 0x2c7   :  { %370 = vsyncpa [#allocation9], 1 }
 0x2c8   :  { %371 = vsyncpa [#allocation4], 1 }

</bundles_post_ra>
